<compile_context>
chip_gen: v7x
topology: tpu7x:2x2x1
jax: 0.10.0
libtpu: 0.0.40
codegen_flags: <defaults>
</compile_context>

<pallas_src>
import functools
import math

import jax
import jax.numpy as jnp
from jax.experimental import pallas as pl
from jax.experimental.pallas import tpu as pltpu

_LANE = 128
_WIDE_LANE = 1024
_SUBLANE = 8
_TARGET_BLOCK_BYTES = 2 * 1024 * 1024   # per input block; 2x double-buffered in+out ~ 8 MiB


def _lse_pooling_kernel(x_ref, o_ref, *, c, r):
    # Elementwise: exp/log on the EUP, sub/add on the VPU; compute in f32.
    x = x_ref[...].astype(jnp.float32)
    o_ref[...] = jnp.log(jnp.exp(x - c) + r).astype(o_ref.dtype)


def lse_pooling(x: jax.Array, r: float = 0.2) -> jax.Array:
    """Pallas implementation of LSE_Pooling.forward (any-rank input, NCHW typical)."""
    orig_shape = x.shape
    orig_dtype = x.dtype
    n_last = orig_shape[-1]
    # Fold the 1/W scale into the exponent: exp(x - r) / W == exp(x - (r + log W)).
    c = float(r) + math.log(float(n_last))

    total = x.size
    itemsize = jnp.dtype(orig_dtype).itemsize

    # ---- lane-dense 2-D view; avoid pad/slice passes whenever possible ----
    if total % _WIDE_LANE == 0:
        lane, padded_total, needs_pad = _WIDE_LANE, total, False
    elif total % _LANE == 0:
        lane, padded_total, needs_pad = _LANE, total, False
    else:
        lane = _LANE
        padded_total = pl.cdiv(total, _LANE) * _LANE
        needs_pad = True    # rare fallback: one pad + one slice pass

    x_flat = jnp.ravel(x)   # reshape only; no dtype change, no extra HBM pass
    if needs_pad:
        x_flat = jnp.pad(x_flat, (0, padded_total - total))
    rows = padded_total // lane
    x2d = x_flat.reshape(rows, lane)

    # ---- block_rows: big tiles, multiple of 8, grid long enough for 2 TCs (v7x) ----
    if rows <= _SUBLANE:
        block_rows = rows   # whole-array block (full-dim block shape is allowed)
    else:
        target_rows = max(
            _SUBLANE,
            (_TARGET_BLOCK_BYTES // (lane * itemsize)) // _SUBLANE * _SUBLANE,
        )
        block_rows = min(target_rows, (rows // _SUBLANE) * _SUBLANE)
        if rows >= 4 * _SUBLANE:
            # keep >= ~4 grid steps so the 'parallel' axis can shard across v7x's 2 cores
            quarter = pl.cdiv(rows, 4 * _SUBLANE) * _SUBLANE
            block_rows = min(block_rows, max(_SUBLANE, quarter))
        block_rows = max(_SUBLANE, block_rows)

    grid = (pl.cdiv(rows, block_rows),)   # masked tail block; no divisor search

    kernel = functools.partial(_lse_pooling_kernel, c=c, r=float(r))

    cost = pl.CostEstimate(
        flops=2 * padded_total,
        transcendentals=2 * padded_total,
        bytes_accessed=2 * padded_total * itemsize,
    )

    out2d = pl.pallas_call(
        kernel,
        out_shape=jax.ShapeDtypeStruct((rows, lane), orig_dtype),
        grid=grid,
        in_specs=[pl.BlockSpec((block_rows, lane), lambda i: (i, 0))],
        out_specs=pl.BlockSpec((block_rows, lane), lambda i: (i, 0)),
        compiler_params=pltpu.CompilerParams(
            dimension_semantics=("parallel",)),
        cost_estimate=cost,
    )(x2d)

    if needs_pad:
        out = out2d.reshape(-1)[:total].reshape(orig_shape)
    else:
        out = out2d.reshape(orig_shape)
    return out


def _reference(x, r=0.2):
    # pure-JAX reference matching the PyTorch forward exactly
    exp_x = jnp.exp(x - r)
    sum_exp_x = jnp.sum(exp_x[..., None], axis=-1)
    return jnp.log((1.0 / x.shape[-1]) * sum_exp_x + r)


if __name__ == "__main__":
    key = jax.random.PRNGKey(0)
    # NCHW input, consistent with a CNN-head feature map
    x = jax.random.normal(key, (2, 4, 16, 16), dtype=jnp.float32)

    out = lse_pooling(x, r=0.2)
    out = jax.block_until_ready(out)

    ref = _reference(x, r=0.2)
    assert out.shape == x.shape, (out.shape, x.shape)
    assert out.dtype == x.dtype, (out.dtype, x.dtype)
    assert jnp.allclose(out, ref, atol=1e-5, rtol=1e-5), "mismatch vs reference"

    print("KERNEL_OK")
</pallas_src>

<mosaic_0001>
module attributes {stable_mosaic.version = 11 : i64} {
  func.func @_lse_pooling_kernel(%arg0: i32, %arg1: memref<2x1024xf32, #tpu.memory_space<vmem>>, %arg2: memref<2x1024xf32, #tpu.memory_space<vmem>>) attributes {dimension_semantics = [#tpu.dimension_semantics<parallel>], iteration_bounds = array<i64: 1>, scalar_prefetch = 0 : i64, scratch_operands = 0 : i64, tpu.core_type = #tpu.core_type<tc>, window_params = [{transform_indices = @transform_0, window_bounds = array<i64: 2, 1024>}, {transform_indices = @transform_1, window_bounds = array<i64: 2, 1024>}]} {
    %c0 = arith.constant 0 : index
    %c0_0 = arith.constant 0 : index
    %0 = vector.load %arg1[%c0, %c0_0] : memref<2x1024xf32, #tpu.memory_space<vmem>>, vector<2x1024xf32>
    %cst = arith.constant 2.97258878 : f32
    %1 = vector.broadcast %cst : f32 to vector<2x1024xf32>
    %2 = arith.subf %0, %1 : vector<2x1024xf32>
    %3 = math.exp %2 : vector<2x1024xf32>
    %cst_1 = arith.constant 2.000000e-01 : f32
    %4 = vector.broadcast %cst_1 : f32 to vector<2x1024xf32>
    %5 = arith.addf %3, %4 : vector<2x1024xf32>
    %6 = math.log %5 : vector<2x1024xf32>
    %c0_2 = arith.constant 0 : index
    %c0_3 = arith.constant 0 : index
    %7 = vector.load %arg2[%c0_2, %c0_3] : memref<2x1024xf32, #tpu.memory_space<vmem>>, vector<2x1024xf32>
    tpu.vector_store %arg2[%c0_2, %c0_3], %6 {strides = array<i32>} : memref<2x1024xf32, #tpu.memory_space<vmem>>, vector<2x1024xf32>,
    return
  }
  func.func @transform_0(%arg0: i32) -> (i32, i32) {
    %c0_i32 = arith.constant 0 : i32
    %c0_i32_0 = arith.constant 0 : i32
    return %arg0, %c0_i32 : i32, i32
  }
  func.func @transform_1(%arg0: i32) -> (i32, i32) {
    %c0_i32 = arith.constant 0 : i32
    %c0_i32_0 = arith.constant 0 : i32
    return %arg0, %c0_i32 : i32, i32
  }
}

</mosaic_0001>

<bundles_post_ra>
// kernel: tpu_custom_call.1
= control target key start
LH: loop header
LB: loop body
LE: loop exit
PB: predicated region body
PF: predicated region fallthrough
CT: control target
= control target key end

     0   :  { %6 = vsyncpa [#allocation3], 0  ;;  %s148_s0 = inlined_call_operand.hbm [shape: f32[2,1024], index: 0, kind: input, shape index: {}]   ;;  %s149_s1 = inlined_call_operand.hbm [shape: f32[2,1024], index: 1, kind: output, shape index: {}]  }
   0x1   :  { %7 = vsyncpa [#allocation4], 0  ;;  %s112_s6 = smov [#allocation2]   ;;  %s64_s10 = scalar_lea.hbm %s148_s0, 256 }
   0x2   :  { %s14_s7 = sshll.u32 %s112_s6, 4  ;;  %p65_p0 = scmp.ne.s32.totalorder %s148_s0, %s64_s10  ;;  %s15_s7 = int_to_ptr.vmem [resolvable:$true] %s14_s7 }
   0x3   :  { %p68_p1 = scmp.lt.u32.totalorder %s64_s10, %s148_s0 }
   0x5   :  { %p70_p2 = pnand %p68_p1, %p65_p0 }
   0x7   :  { %73 = shalt.err (!%p70_p2)
}
   0x8   :  { %s74_s15 = scalar_lea.vmem %s15_s7, 256  ;;  %p79_p4 = scmp.lt.s32.totalorder %s15_s7, %s15_s7 }
   0x9   :  { %p75_p3 = scmp.ne.s32.totalorder %s15_s7, %s74_s15  ;;  %p80_p5 = scmp.lt.s32.totalorder %s74_s15, %s74_s15 }
   0xb   :  { %p81_p6 = por %p80_p5, %p79_p4 }
   0xd   :  { %p82_p7 = pnand %p81_p6, %p75_p3 }
   0xf   :  { %85 = shalt.err (!%p82_p7)
}
  0x10   :  { %17 = dma.hbm_to_vmem [thread:$0]  %s148_s0, 256, %s15_s7, [#allocation3]  }
  0x11   :  { %108 = dma.done.wait [#allocation3], 256  }
  0x12   :  { %109 = vsyncadd [#allocation3], 4294967040  ;;  %v21_v0 = vld [vmem:[#allocation2] sm:$0xff]  ;;  %v22_v1 = vld [vmem:[#allocation2 + $0x8] sm:$0xff]  ;;  %s113_s18 = smov [#allocation5]  }
  0x13   :  { %v52_v2 = vadd.f32 -2.9725888, %v21_v0  ;;  %v53_v3 = vadd.f32 -2.9725888, %v22_v1  ;;  %s43_s19 = sshll.u32 %s113_s18, 4  ;;  %s44_s19 = int_to_ptr.vmem [resolvable:$true] %s43_s19 }
  0x14   :  { %s86_s0 = scalar_lea.vmem %s44_s19, 256  ;;  %p91_p9 = scmp.lt.s32.totalorder %s44_s19, %s44_s19 }
  0x15   :  { %v25_v4 = vmul.f32 1.442695, %v52_v2  ;;  %v27_v5 = vmul.f32 1.442695, %v53_v3  ;;  %p87_p8 = scmp.ne.s32.totalorder %s44_s19, %s86_s0  ;;  %p92_p10 = scmp.lt.s32.totalorder %s86_s0, %s86_s0 }
  0x17   :  { %56 = vpow2.f32 %v25_v4  ;;  %p93_p11 = por %p92_p10, %p91_p9 }
  0x18   :  { %58 = vpow2.f32 %v27_v5 }
  0x19   :  { %p94_p12 = pnand %p93_p11, %p87_p8 }
  0x21   :  { %v57_v6 = vpop.eup %56 }
  0x22   :  { %v59_v7 = vpop.eup %58  ;;  %v29_v8 = vadd.f32 0.2, %v57_v6 }
  0x23   :  { %v30_v9 = vadd.f32 0.2, %v59_v7 }
  0x24   :  { %60 = vlog2.f32 %v29_v8 }
  0x25   :  { %62 = vlog2.f32 %v30_v9 }
  0x2e   :  { %v61_v10 = vpop.eup %60 }
  0x2f   :  { %v63_v11 = vpop.eup %62  ;;  %v32_v12 = vmul.f32 0.6931472, %v61_v10 }
  0x30   :  { %v34_v13 = vmul.f32 0.6931472, %v63_v11 }
  0x31   :  { %35 = vst [vmem:[#allocation5] sm:$0xff] %v32_v12 }
  0x32   :  { %36 = vst [vmem:[#allocation5 + $0x8] sm:$0xff] %v34_v13 }
  0x33   :  { %97 = shalt.err (!%p94_p12)
}
  0x34   :  { %s98_s22 = scalar_lea.hbm %s149_s1, 256 }
  0x35   :  { %p99_p13 = scmp.ne.s32.totalorder %s149_s1, %s98_s22  ;;  %p102_p0 = scmp.lt.u32.totalorder %s98_s22, %s149_s1 }
  0x37   :  { %p104_p1 = pnand %p102_p0, %p99_p13 }
  0x39   :  { %107 = shalt.err (!%p104_p1)
}
  0x3a   :  { %46 = dma.vmem_to_hbm [thread:$0]  %s44_s19, 256, %s149_s1, [#allocation4]  }
  0x3b   :  { %110 = dma.done.wait [#allocation4], 256  }
  0x3c   :  { %111 = vsyncadd [#allocation4], 4294967040 }
  0x3d   :  { %50 = vsyncpa [#allocation3], 1 }
  0x3e   :  { %51 = vsyncpa [#allocation4], 1 }

</bundles_post_ra>
